<compile_context>
chip_gen: v5e
topology: v5e:2x2
jax: 0.10.0
libtpu: 0.0.40
codegen_flags: <defaults>
</compile_context>

<pallas_src>
import jax
import jax.numpy as jnp
from jax.experimental import pallas as pl
from jax.experimental.pallas import tpu as pltpu


def _decoder_block_kernel(x_ref, w_ref, v_ref, out_ref, xp_ref):
    # x_ref  : (1, H, W*Cin)       one image, lane-dense packed (channel fastest within a row)
    # w_ref  : (3, W*Cin, W*Cmid)  banded conv weights (BN1 scale folded in), one slab per dh
    # v_ref  : (3, W*Cmid)         rows = [BN1 bias, BN2 scale, BN2 bias], tiled over W
    # out_ref: (1, H, W*Cmid)      conv+BN1+ReLU1+BN2+ReLU2 result (pre pixel-shuffle)
    # xp_ref : (H+2, W*Cin)        VMEM scratch for the H-direction halo
    H = out_ref.shape[1]
    WCin = x_ref.shape[2]
    WCmid = out_ref.shape[2]

    # In-kernel H halo: zero the top/bottom rows, copy the image into rows 1..H.
    zero_row = jnp.zeros((1, WCin), jnp.float32)
    xp_ref[0:1, :] = zero_row
    xp_ref[H + 1:H + 2, :] = zero_row
    xp_ref[1:H + 1, :] = x_ref[0]

    # 3x3 conv as 3 lane-dense matmuls: (H, W*Cin) @ (W*Cin, W*Cmid), f32 accumulate on MXU.
    acc = jnp.zeros((H, WCmid), jnp.float32)
    for dh in range(3):  # static Python loop -> fully unrolled at trace time
        acc = acc + jnp.dot(xp_ref[dh:dh + H, :], w_ref[dh],
                            preferred_element_type=jnp.float32)

    t = jnp.maximum(acc + v_ref[0:1, :], 0.0)                 # BN1 (scale folded in W) + ReLU1
    t = jnp.maximum(t * v_ref[1:2, :] + v_ref[2:3, :], 0.0)   # BN2 + ReLU2 (pre-shuffle, valid)
    out_ref[0] = t.astype(out_ref.dtype)


@jax.jit
def decoder_block(x_nchw, w_oihw, scale1, bias1, scale2, bias2):
    """Forward pass of DecoderBlock (pixelshuffle mode, BN_enable=True, inference-mode BN).

    x_nchw : (N, Cin, H, W)  float32
    w_oihw : (Cmid, Cin, 3, 3)
    scale1, bias1 : (Cmid,)   folded BN1 params
    scale2, bias2 : (Cout,)   folded BN2 params, Cout = Cmid // 4
    returns: (N, Cout, 2H, 2W) in NCHW (PyTorch convention)
    """
    N, Cin, H, W = x_nchw.shape
    Cmid = w_oihw.shape[0]
    Cout = Cmid // 4

    # ---- glue: lane-dense input packing  x_packed[n, h, w*Cin + c] = x[n, c, h, w] ----
    x_packed = (jnp.transpose(x_nchw, (0, 2, 3, 1))
                .reshape(N, H, W * Cin).astype(jnp.float32))

    # ---- conv weights -> HWIO with BN1 scale folded into the output channel ----
    k_hwio = (jnp.transpose(w_oihw, (2, 3, 1, 0)).astype(jnp.float32)
              * scale1.astype(jnp.float32)[None, None, None, :])          # (3, 3, Cin, Cmid)

    # Banded big weight: w_band[dh, wi*Cin + c, wo*Cmid + m] = k_hwio[dh, wi-wo+1, c, m]
    # (zero outside the band). The clipped band realizes the W-direction "same" padding.
    sel = jnp.stack([jnp.eye(W, k=1 - dw, dtype=jnp.float32) for dw in range(3)])  # (dw, wi, wo)
    w_band = jnp.einsum('dio,hdcm->hicom', sel, k_hwio).reshape(3, W * Cin, W * Cmid)

    # Per-lane BN vectors, tiled over W. BN2 acts on out channel c = m // 4 (PixelShuffle(2)),
    # so its params are repeated over each group of 4 consecutive mid channels.
    b1_l = jnp.tile(bias1.astype(jnp.float32), W)
    s2_l = jnp.tile(jnp.repeat(scale2.astype(jnp.float32), 4), W)
    b2_l = jnp.tile(jnp.repeat(bias2.astype(jnp.float32), 4), W)
    bn_vec = jnp.stack([b1_l, s2_l, b2_l])                                 # (3, W*Cmid)

    grid_spec = pltpu.PrefetchScalarGridSpec(
        num_scalar_prefetch=0,
        grid=(N,),
        in_specs=[
            pl.BlockSpec((1, H, W * Cin), lambda n: (n, 0, 0)),
            # Constant index_maps: weights / BN vectors stay resident in VMEM across steps.
            pl.BlockSpec((3, W * Cin, W * Cmid), lambda n: (0, 0, 0)),
            pl.BlockSpec((3, W * Cmid), lambda n: (0, 0)),
        ],
        out_specs=pl.BlockSpec((1, H, W * Cmid), lambda n: (n, 0, 0)),
        scratch_shapes=[pltpu.VMEM((H + 2, W * Cin), jnp.float32)],
    )

    y_mid = pl.pallas_call(
        _decoder_block_kernel,
        out_shape=jax.ShapeDtypeStruct((N, H, W * Cmid), jnp.float32),
        grid_spec=grid_spec,
        compiler_params=pltpu.CompilerParams(dimension_semantics=("parallel",)),
    )(x_packed, w_band, bn_vec)

    # ---- glue: PixelShuffle(2) permutation, straight to NCHW ----
    # y[n, c, 2h+i, 2w+j] = y_mid[n, h, w*Cmid + 4c + 2i + j]
    y = y_mid.reshape(N, H, W, Cout, 2, 2)
    y = jnp.transpose(y, (0, 3, 1, 4, 2, 5)).reshape(N, Cout, 2 * H, 2 * W)
    return y


def _reference(x_nchw, w_oihw, scale1, bias1, scale2, bias2):
    """Pure-JAX reference mirroring the PyTorch forward (inference-mode BN)."""
    y = jax.lax.conv_general_dilated(
        x_nchw, w_oihw, window_strides=(1, 1), padding=((1, 1), (1, 1)),
        dimension_numbers=("NCHW", "OIHW", "NCHW"))
    y = y * scale1[None, :, None, None] + bias1[None, :, None, None]
    y = jnp.maximum(y, 0.0)
    N, Cm, H, W = y.shape
    Cout = Cm // 4
    y = y.reshape(N, Cout, 2, 2, H, W)
    y = jnp.transpose(y, (0, 1, 4, 2, 5, 3)).reshape(N, Cout, 2 * H, 2 * W)
    y = y * scale2[None, :, None, None] + bias2[None, :, None, None]
    return jnp.maximum(y, 0.0)


if __name__ == "__main__":
    key = jax.random.PRNGKey(0)
    ks = jax.random.split(key, 12)

    # Module config: DecoderBlock(in_channels=4, mid_channels=8, out_channels=2)
    # (pixelshuffle => out_channels = mid_channels // 4)
    N, Cin, H, W = 2, 4, 16, 16
    Cmid, Cout = 8, 2
    eps = 1e-5

    x = jax.random.normal(ks[0], (N, Cin, H, W), jnp.float32)
    w_oihw = jax.random.normal(ks[1], (Cmid, Cin, 3, 3), jnp.float32) * 0.1

    gamma1 = jax.random.uniform(ks[2], (Cmid,), minval=0.5, maxval=1.5)
    beta1 = jax.random.normal(ks[3], (Cmid,)) * 0.1
    rmean1 = jax.random.normal(ks[4], (Cmid,)) * 0.1
    rvar1 = jax.random.uniform(ks[5], (Cmid,), minval=0.5, maxval=1.5)

    gamma2 = jax.random.uniform(ks[6], (Cout,), minval=0.5, maxval=1.5)
    beta2 = jax.random.normal(ks[7], (Cout,)) * 0.1
    rmean2 = jax.random.normal(ks[8], (Cout,)) * 0.1
    rvar2 = jax.random.uniform(ks[9], (Cout,), minval=0.5, maxval=1.5)

    # Fold BatchNorm (inference) into per-channel scale/bias.
    scale1 = gamma1 / jnp.sqrt(rvar1 + eps)
    bias1 = beta1 - rmean1 * scale1
    scale2 = gamma2 / jnp.sqrt(rvar2 + eps)
    bias2 = beta2 - rmean2 * scale2

    out = decoder_block(x, w_oihw, scale1, bias1, scale2, bias2)
    out = jax.block_until_ready(out)

    ref = _reference(x, w_oihw, scale1, bias1, scale2, bias2)
    assert out.shape == (N, Cout, 2 * H, 2 * W), out.shape
    assert jnp.allclose(out, ref, atol=1e-4, rtol=1e-4), float(jnp.max(jnp.abs(out - ref)))

    print("KERNEL_OK")
</pallas_src>

<mosaic_0001>
module attributes {stable_mosaic.version = 11 : i64} {
  func.func @_decoder_block_kernel(%arg0: i32, %arg1: memref<1x16x64xf32, #tpu.memory_space<vmem>>, %arg2: memref<3x64x128xf32, #tpu.memory_space<vmem>>, %arg3: memref<3x128xf32, #tpu.memory_space<vmem>>, %arg4: memref<1x16x128xf32, #tpu.memory_space<vmem>>, %arg5: memref<18x64xf32, #tpu.memory_space<vmem>>) attributes {dimension_semantics = [#tpu.dimension_semantics<parallel>], iteration_bounds = array<i64: 2>, scalar_prefetch = 0 : i64, scratch_operands = 1 : i64, tpu.core_type = #tpu.core_type<tc>, window_params = [{transform_indices = @transform_0, window_bounds = array<i64: 1, 16, 64>}, {pipeline_mode = #tpu.pipeline_mode<synchronous>, transform_indices = @transform_1, window_bounds = array<i64: 3, 64, 128>}, {pipeline_mode = #tpu.pipeline_mode<synchronous>, transform_indices = @transform_2, window_bounds = array<i64: 3, 128>}, {transform_indices = @transform_3, window_bounds = array<i64: 1, 16, 128>}]} {
    %cst = arith.constant 0.000000e+00 : f32
    %0 = vector.broadcast %cst : f32 to vector<1x64xf32>
    %c0 = arith.constant 0 : index
    %c0_0 = arith.constant 0 : index
    %1 = vector.load %arg5[%c0, %c0_0] : memref<18x64xf32, #tpu.memory_space<vmem>>, vector<1x64xf32>
    tpu.vector_store %arg5[%c0, %c0_0], %0 {strides = array<i32>} : memref<18x64xf32, #tpu.memory_space<vmem>>, vector<1x64xf32>,
    %c17 = arith.constant 17 : index
    %c0_1 = arith.constant 0 : index
    %2 = vector.load %arg5[%c17, %c0_1] : memref<18x64xf32, #tpu.memory_space<vmem>>, vector<1x64xf32>
    tpu.vector_store %arg5[%c17, %c0_1], %0 {strides = array<i32>} : memref<18x64xf32, #tpu.memory_space<vmem>>, vector<1x64xf32>,
    %c0_2 = arith.constant 0 : index
    %c0_3 = arith.constant 0 : index
    %c0_4 = arith.constant 0 : index
    %3 = vector.load %arg1[%c0_2, %c0_3, %c0_4] : memref<1x16x64xf32, #tpu.memory_space<vmem>>, vector<1x16x64xf32>
    %4 = vector.shape_cast %3 : vector<1x16x64xf32> to vector<16x64xf32>
    %c1 = arith.constant 1 : index
    %c0_5 = arith.constant 0 : index
    %5 = vector.load %arg5[%c1, %c0_5] : memref<18x64xf32, #tpu.memory_space<vmem>>, vector<16x64xf32>
    tpu.vector_store %arg5[%c1, %c0_5], %4 {strides = array<i32>} : memref<18x64xf32, #tpu.memory_space<vmem>>, vector<16x64xf32>,
    %cst_6 = arith.constant 0.000000e+00 : f32
    %6 = vector.broadcast %cst_6 : f32 to vector<16x128xf32>
    %c0_7 = arith.constant 0 : index
    %c0_8 = arith.constant 0 : index
    %7 = vector.load %arg5[%c0_7, %c0_8] : memref<18x64xf32, #tpu.memory_space<vmem>>, vector<16x64xf32>
    %c0_9 = arith.constant 0 : index
    %c0_10 = arith.constant 0 : index
    %c0_11 = arith.constant 0 : index
    %8 = vector.load %arg2[%c0_9, %c0_10, %c0_11] : memref<3x64x128xf32, #tpu.memory_space<vmem>>, vector<1x64x128xf32>
    %9 = vector.shape_cast %8 : vector<1x64x128xf32> to vector<64x128xf32>
    %cst_12 = arith.constant dense<0.000000e+00> : vector<16x128xf32>
    %10 = tpu.matmul %7, %9, %cst_12 {dimension_numbers = #tpu.dot_dimension_numbers<[1], [0], [0], [1], [0, 0, 1, 1], [], []>} : vector<16x64xf32>, vector<64x128xf32>, vector<16x128xf32> -> vector<16x128xf32>
    %11 = arith.addf %6, %10 : vector<16x128xf32>
    %c1_13 = arith.constant 1 : index
    %c0_14 = arith.constant 0 : index
    %12 = vector.load %arg5[%c1_13, %c0_14] : memref<18x64xf32, #tpu.memory_space<vmem>>, vector<16x64xf32>
    %c1_15 = arith.constant 1 : index
    %c0_16 = arith.constant 0 : index
    %c0_17 = arith.constant 0 : index
    %13 = vector.load %arg2[%c1_15, %c0_16, %c0_17] : memref<3x64x128xf32, #tpu.memory_space<vmem>>, vector<1x64x128xf32>
    %14 = vector.shape_cast %13 : vector<1x64x128xf32> to vector<64x128xf32>
    %cst_18 = arith.constant dense<0.000000e+00> : vector<16x128xf32>
    %15 = tpu.matmul %12, %14, %cst_18 {dimension_numbers = #tpu.dot_dimension_numbers<[1], [0], [0], [1], [0, 0, 1, 1], [], []>} : vector<16x64xf32>, vector<64x128xf32>, vector<16x128xf32> -> vector<16x128xf32>
    %16 = arith.addf %11, %15 : vector<16x128xf32>
    %c2 = arith.constant 2 : index
    %c0_19 = arith.constant 0 : index
    %17 = vector.load %arg5[%c2, %c0_19] : memref<18x64xf32, #tpu.memory_space<vmem>>, vector<16x64xf32>
    %c2_20 = arith.constant 2 : index
    %c0_21 = arith.constant 0 : index
    %c0_22 = arith.constant 0 : index
    %18 = vector.load %arg2[%c2_20, %c0_21, %c0_22] : memref<3x64x128xf32, #tpu.memory_space<vmem>>, vector<1x64x128xf32>
    %19 = vector.shape_cast %18 : vector<1x64x128xf32> to vector<64x128xf32>
    %cst_23 = arith.constant dense<0.000000e+00> : vector<16x128xf32>
    %20 = tpu.matmul %17, %19, %cst_23 {dimension_numbers = #tpu.dot_dimension_numbers<[1], [0], [0], [1], [0, 0, 1, 1], [], []>} : vector<16x64xf32>, vector<64x128xf32>, vector<16x128xf32> -> vector<16x128xf32>
    %21 = arith.addf %16, %20 : vector<16x128xf32>
    %c0_24 = arith.constant 0 : index
    %c0_25 = arith.constant 0 : index
    %22 = vector.load %arg3[%c0_24, %c0_25] : memref<3x128xf32, #tpu.memory_space<vmem>>, vector<1x128xf32>
    %23 = vector.broadcast %22 : vector<1x128xf32> to vector<16x128xf32>
    %24 = arith.addf %21, %23 : vector<16x128xf32>
    %cst_26 = arith.constant 0.000000e+00 : f32
    %25 = vector.broadcast %cst_26 : f32 to vector<16x128xf32>
    %26 = arith.maximumf %24, %25 : vector<16x128xf32>
    %c1_27 = arith.constant 1 : index
    %c0_28 = arith.constant 0 : index
    %27 = vector.load %arg3[%c1_27, %c0_28] : memref<3x128xf32, #tpu.memory_space<vmem>>, vector<1x128xf32>
    %28 = vector.broadcast %27 : vector<1x128xf32> to vector<16x128xf32>
    %29 = arith.mulf %26, %28 : vector<16x128xf32>
    %c2_29 = arith.constant 2 : index
    %c0_30 = arith.constant 0 : index
    %30 = vector.load %arg3[%c2_29, %c0_30] : memref<3x128xf32, #tpu.memory_space<vmem>>, vector<1x128xf32>
    %31 = vector.broadcast %30 : vector<1x128xf32> to vector<16x128xf32>
    %32 = arith.addf %29, %31 : vector<16x128xf32>
    %cst_31 = arith.constant 0.000000e+00 : f32
    %33 = vector.broadcast %cst_31 : f32 to vector<16x128xf32>
    %34 = arith.maximumf %32, %33 : vector<16x128xf32>
    %c0_32 = arith.constant 0 : index
    %c0_33 = arith.constant 0 : index
    %c0_34 = arith.constant 0 : index
    %35 = vector.load %arg4[%c0_32, %c0_33, %c0_34] : memref<1x16x128xf32, #tpu.memory_space<vmem>>, vector<1x16x128xf32>
    %36 = vector.shape_cast %35 : vector<1x16x128xf32> to vector<16x128xf32>
    %37 = vector.shape_cast %34 : vector<16x128xf32> to vector<1x16x128xf32>
    tpu.vector_store %arg4[%c0_32, %c0_33, %c0_34], %37 {strides = array<i32>} : memref<1x16x128xf32, #tpu.memory_space<vmem>>, vector<1x16x128xf32>,
    return
  }
  func.func @transform_0(%arg0: i32) -> (i32, i32, i32) {
    %c0_i32 = arith.constant 0 : i32
    %c0_i32_0 = arith.constant 0 : i32
    %c0_i32_1 = arith.constant 0 : i32
    return %arg0, %c0_i32, %c0_i32_0 : i32, i32, i32
  }
  func.func @transform_1(%arg0: i32) -> (i32, i32, i32) {
    %c0_i32 = arith.constant 0 : i32
    %c0_i32_0 = arith.constant 0 : i32
    %c0_i32_1 = arith.constant 0 : i32
    %c0_i32_2 = arith.constant 0 : i32
    return %c0_i32, %c0_i32_0, %c0_i32_1 : i32, i32, i32
  }
  func.func @transform_2(%arg0: i32) -> (i32, i32) {
    %c0_i32 = arith.constant 0 : i32
    %c0_i32_0 = arith.constant 0 : i32
    %c0_i32_1 = arith.constant 0 : i32
    return %c0_i32, %c0_i32_0 : i32, i32
  }
  func.func @transform_3(%arg0: i32) -> (i32, i32, i32) {
    %c0_i32 = arith.constant 0 : i32
    %c0_i32_0 = arith.constant 0 : i32
    %c0_i32_1 = arith.constant 0 : i32
    return %arg0, %c0_i32, %c0_i32_0 : i32, i32, i32
  }
}

</mosaic_0001>

<bundles_post_ra>
// kernel: tile.18
= control target key start
LH: loop header
LB: loop body
LE: loop exit
PB: predicated region body
PF: predicated region fallthrough
CT: control target
= control target key end

     0   :  { %vm7_vm0 = vcmask 31744   ;;  %vm13_vm1 = vcmask 64544   ;;  %s39_s0 = inlined_call_operand.vmem [shape: f32[2,4], index: 0, kind: input, shape index: {}]   ;;  %s40_s1 = inlined_call_operand.vmem [shape: f32[8], index: 1, kind: output, shape index: {}]  }
   0x1   :  { %v4_v0 = vld [vmem:[%s39_s0] sm:$0x3]  ;;  %s22_s0 = smov 4  }
   0x2   :  { %5 = vst [vmem:[#allocation1] sm:$0x3] %v4_v0 }
   0x9   :  { %v10_v1 = vld [vmem:[#allocation1 + $0x1] sm:$0x1]   ;;  %v6_v2 = vld [vmem:[#allocation1] sm:$0x1]  }
   0xa   :  { %11 = vrot.lane.b32.xlu0 %v10_v1, %s22_s0  ;;  %8 = vst.msk [vmem:[#allocation0] sm:$0x1] %vm7_vm0, %v6_v2  }
  0x7c   :  { %v12_v3 = vpop.permute.xlu0 %11  }
  0x7d   :  { %14 = vst.msk [vmem:[#allocation0] sm:$0x1] %vm13_vm1, %v12_v3  }
  0x84   :  { %v17_v4 = vld [vmem:[#allocation0] sm:$0x1] }
  0x85   :  { %20 = vst [vmem:[%s40_s1] sm:$0x1] %v17_v4 }

// kernel: tile.19
= control target key start
LH: loop header
LB: loop body
LE: loop exit
PB: predicated region body
PF: predicated region fallthrough
CT: control target
= control target key end

     0   :  { %s28_s0 = inlined_call_operand.vmem [shape: f32[8], index: 0, kind: input, shape index: {}]   ;;  %s29_s1 = inlined_call_operand.vmem [shape: f32[16,8], index: 1, kind: output, shape index: {}]  }
   0x1   :  { %v4_v0 = vld [vmem:[%s28_s0] ss:$0 sm:$0xff] }
   0x2   :  { %5 = vst [vmem:[%s29_s1] sm:$0xff] %v4_v0 }
   0x3   :  { %8 = vst [vmem:[%s29_s1 + $0x8] sm:$0xff] %v4_v0 }

// kernel: tile.24
= control target key start
LH: loop header
LB: loop body
LE: loop exit
PB: predicated region body
PF: predicated region fallthrough
CT: control target
= control target key end

     0   :  { %s131_s10 = smov 120   ;;  %s132_s11 = smov 104   ;;  %vm3_vm0 = vcmask 64512   ;;  %vm9_vm1 = vcmask 1048512   ;;  %vm15_vm2 = vcmask 982912   ;;  %vm21_vm3 = vcmask 917312   ;;  %s207_s0 = inlined_call_operand.vmem [shape: f32[16,8], index: 0, kind: input, shape index: {}]   ;;  %s208_s1 = inlined_call_operand.vmem [shape: f32[1,128], index: 1, kind: output, shape index: {}]  }
   0x1   :  { %v101_v0 = vld [vmem:[%s207_s0 + $0xf] sm:$0x1]   ;;  %v103_v1 = vld [vmem:[%s207_s0 + $0xd] sm:$0x1]   ;;  %v105_v2 = vld [vmem:[%s207_s0 + $0xb] sm:$0x1]  }
   0x2   :  { %7 = vrot.lane.b32.xlu0 %v101_v0, %s131_s10  ;;  %19 = vrot.lane.b32.xlu1 %v103_v1, %s132_s11  ;;  %s133_s14 = smov 88   ;;  %v102_v3 = vld [vmem:[%s207_s0 + $0xe] sm:$0x1]   ;;  %v104_v4 = vld [vmem:[%s207_s0 + $0xc] sm:$0x1]   ;;  %s134_s19 = smov 112  }
   0x3   :  { %31 = vrot.lane.b32.xlu2 %v105_v2, %s133_s14  ;;  %s135_s20 = smov 96   ;;  %v106_v5 = vld [vmem:[%s207_s0 + $0xa] sm:$0x1]   ;;  %s136_s23 = smov 80   ;;  %v107_v6 = vld [vmem:[%s207_s0 + $0x9] sm:$0x1]  }
   0x4   :  { %v108_v7 = vld [vmem:[%s207_s0 + $0x8] sm:$0x1]   ;;  %s137_s28 = smov 72   ;;  %s138_s29 = smov 64   ;;  %v109_v8 = vld [vmem:[%s207_s0 + $0x7] sm:$0x1]  }
   0x5   :  { %s139_s3 = smov 56   ;;  %v110_v9 = vld [vmem:[%s207_s0 + $0x6] sm:$0x1]   ;;  %v111_v10 = vld [vmem:[%s207_s0 + $0x5] sm:$0x1]   ;;  %s140_s8 = smov 48  }
   0x6   :  { %s141_s9 = smov 40   ;;  %v112_v11 = vld [vmem:[%s207_s0 + $0x4] sm:$0x1]   ;;  %s142_s12 = smov 32   ;;  %v113_v12 = vld [vmem:[%s207_s0 + $0x3] sm:$0x1]  }
   0x7   :  { %v114_v13 = vld [vmem:[%s207_s0 + $0x2] sm:$0x1]   ;;  %s143_s17 = smov 24   ;;  %s144_s18 = smov 16   ;;  %v115_v14 = vld [vmem:[%s207_s0 + $0x1] sm:$0x1]  }
   0x8   :  { %s145_s21 = smov 8   ;;  %v2_v15 = vld [vmem:[%s207_s0] sm:$0x1]   ;;  %vm27_vm4 = vcmask 851712   ;;  %vm33_vm5 = vcmask 786112   ;;  %vm39_vm6 = vcmask 720512  }
   0x9   :  { %4 = vst.msk [vmem:[#allocation0] sm:$0x1] %vm3_vm0, %v2_v15   ;;  %vm45_vm7 = vcmask 654912   ;;  %vm51_vm8 = vcmask 589312   ;;  %vm57_vm9 = vcmask 523712   ;;  %vm63_vm10 = vcmask 458112  }
   0xa   :  { %13 = vrot.lane.b32.xlu0 %v102_v3, %s134_s19  ;;  %25 = vrot.lane.b32.xlu1 %v104_v4, %s135_s20  ;;  %vm69_vm11 = vcmask 392512   ;;  %vm75_vm12 = vcmask 326912   ;;  %vm81_vm13 = vcmask 261312   ;;  %vm87_vm14 = vcmask 195712  }
   0xb   :  { %37 = vrot.lane.b32.xlu2 %v106_v5, %s136_s23  ;;  %vm93_vm15 = vcmask 130112  }
  0x12   :  { %43 = vrot.lane.b32.xlu0 %v107_v6, %s137_s28  ;;  %49 = vrot.lane.b32.xlu1 %v108_v7, %s138_s29 }
  0x13   :  { %55 = vrot.lane.b32.xlu2 %v109_v8, %s139_s3 }
  0x1a   :  { %61 = vrot.lane.b32.xlu0 %v110_v9, %s140_s8  ;;  %67 = vrot.lane.b32.xlu1 %v111_v10, %s141_s9 }
  0x1b   :  { %73 = vrot.lane.b32.xlu2 %v112_v11, %s142_s12 }
  0x22   :  { %79 = vrot.lane.b32.xlu0 %v113_v12, %s143_s17  ;;  %85 = vrot.lane.b32.xlu1 %v114_v13, %s144_s18 }
  0x23   :  { %91 = vrot.lane.b32.xlu2 %v115_v14, %s145_s21 }
  0x5d   :  { %v32_v16 = vpop.permute.xlu2 %31  }
  0x65   :  { %v38_v17 = vpop.permute.xlu2 %37  }
  0x6d   :  { %v56_v18 = vpop.permute.xlu2 %55  }
  0x74   :  { %v8_v19 = vpop.permute.xlu0 %7   ;;  %v20_v20 = vpop.permute.xlu1 %19  }
  0x75   :  { %10 = vst.msk [vmem:[#allocation0] sm:$0x1] %vm9_vm1, %v8_v19   ;;  %v74_v21 = vpop.permute.xlu2 %73  }
  0x7c   :  { %v14_v22 = vpop.permute.xlu0 %13   ;;  %v26_v23 = vpop.permute.xlu1 %25  }
  0x7d   :  { %16 = vst.msk [vmem:[#allocation0] sm:$0x1] %vm15_vm2, %v14_v22   ;;  %v92_v24 = vpop.permute.xlu2 %91  }
  0x7e   :  { %22 = vst.msk [vmem:[#allocation0] sm:$0x1] %vm21_vm3, %v20_v20  }
  0x7f   :  { %28 = vst.msk [vmem:[#allocation0] sm:$0x1] %vm27_vm4, %v26_v23  }
  0x80   :  { %34 = vst.msk [vmem:[#allocation0] sm:$0x1] %vm33_vm5, %v32_v16  }
  0x81   :  { %40 = vst.msk [vmem:[#allocation0] sm:$0x1] %vm39_vm6, %v38_v17  }
  0x84   :  { %v44_v25 = vpop.permute.xlu0 %43   ;;  %v50_v26 = vpop.permute.xlu1 %49  }
  0x85   :  { %46 = vst.msk [vmem:[#allocation0] sm:$0x1] %vm45_vm7, %v44_v25  }
  0x86   :  { %52 = vst.msk [vmem:[#allocation0] sm:$0x1] %vm51_vm8, %v50_v26  }
  0x87   :  { %58 = vst.msk [vmem:[#allocation0] sm:$0x1] %vm57_vm9, %v56_v18  }
  0x8c   :  { %v62_v27 = vpop.permute.xlu0 %61   ;;  %v68_v28 = vpop.permute.xlu1 %67  }
  0x8d   :  { %64 = vst.msk [vmem:[#allocation0] sm:$0x1] %vm63_vm10, %v62_v27  }
  0x8e   :  { %70 = vst.msk [vmem:[#allocation0] sm:$0x1] %vm69_vm11, %v68_v28  }
  0x8f   :  { %76 = vst.msk [vmem:[#allocation0] sm:$0x1] %vm75_vm12, %v74_v21  }
  0x94   :  { %v80_v29 = vpop.permute.xlu0 %79   ;;  %v86_v30 = vpop.permute.xlu1 %85  }
  0x95   :  { %82 = vst.msk [vmem:[#allocation0] sm:$0x1] %vm81_vm13, %v80_v29  }
  0x96   :  { %88 = vst.msk [vmem:[#allocation0] sm:$0x1] %vm87_vm14, %v86_v30  }
  0x97   :  { %94 = vst.msk [vmem:[#allocation0] sm:$0x1] %vm93_vm15, %v92_v24  }
  0x9e   :  { %v97_v31 = vld [vmem:[#allocation0] sm:$0x1] }
  0x9f   :  { %100 = vst [vmem:[%s208_s1] sm:$0x1] %v97_v31 }

// kernel: decoder_block.1
= control target key start
LH: loop header
LB: loop body
LE: loop exit
PB: predicated region body
PF: predicated region fallthrough
CT: control target
= control target key end

     0   :  { %s457_s12 = smov 0   ;;  %s572_s0 = inlined_call_operand.vmem [shape: f32[2,16,64], index: 0, kind: input, shape index: {}]   ;;  %s573_s1 = inlined_call_operand.vmem [shape: f32[3,64,128], index: 1, kind: input, shape index: {}]   ;;  %s574_s2 = inlined_call_operand.vmem [shape: f32[3,128], index: 2, kind: input, shape index: {}]   ;;  %s575_s3 = inlined_call_operand.vmem [shape: f32[2,16,128], index: 3, kind: output, shape index: {}]  }
   0x1 LB: > { %s373_s13 = sadd.s32 4294967295, %s434_s12   ;;  %p377_p0 = scmp.ge.s32.totalorder %s434_s12, 1  ;;  %s434_s12 = sphi %s457_s12, %s13_s12  }
   0x2   : > { %p137_p1 = scmp.lt.s32.totalorder %s434_s12, 3 }
   0x4   : > { %p138_p2 = pnand %p377_p0, %p137_p1 }
   0x5   : > { %p161_p3 = scmp.lt.s32.totalorder (!%p138_p2), %s373_s13, 1 }
   0x6   : > { %141 = sbr.rel (%p138_p2) target bundleno = 181 (0xb5), region = 32 }
   0xb   : > { %v401_v0 = vld [vmem:[%s573_s1 + $0xb8] sm:$0xff]  ;;  %v400_v1 = vld [vmem:[%s573_s1 + $0xb0] sm:$0xff]  ;;  %vm171_vm0 = vcmask 516096   ;;  %v399_v5 = vld [vmem:[%s573_s1 + $0xa8] sm:$0xff]  ;;  %s577_s13 = smov (!%p161_p3, %s373_s13), 1  ;;  %v436_v8 = vmov 0.0  }
   0xc   : > { %v389_v2 = vld [vmem:[%s573_s1 + $0x78] sm:$0xff]  ;;  %283 = vmatpush.msra.mxu2 %v401_v0  ;;  %v388_v4 = vld [vmem:[%s573_s1 + $0x70] sm:$0xff]  ;;  %v387_v7 = vld [vmem:[%s573_s1 + $0x68] sm:$0xff]  ;;  %172 = vst.msk [vmem:[#allocation2] sm:$0x1] %vm171_vm0, %v436_v8  ;;  %s406_s9 = sshll.u32 %s577_s13, 4 }
   0xd   : > { %214 = vmatpush.msra.mxu0 %v389_v2  ;;  %v188_v3 = vld [vmem:[%s573_s1 + $0x38] sm:$0xff]  ;;  %408 = vmatpush.msra.mxu3 %v389_v2  ;;  %v187_v6 = vld [vmem:[%s573_s1 + $0x30] sm:$0xff]  ;;  %v186_v9 = vld [vmem:[%s573_s1 + $0x28] sm:$0xff]  ;;  %173 = vst.msk [vmem:[#allocation2 + $0x11] sm:$0x1] %vm171_vm0, %v436_v8  ;;  %vm176_vm1 = vcmask 523264   ;;  %s165_s16 = scalar_lea.vmem %s572_s0, %s406_s9  ;;  %s170_s25 = scalar_lea.vmem %s575_s3, %s406_s9 }
   0xe   : > { %243 = vmatpush.msra.mxu1 %v188_v3  ;;  %284 = vmatpush.msra.mxu2 %v400_v1  ;;  %v398_v10 = vld [vmem:[%s573_s1 + $0xa0] sm:$0xff]  ;;  %v397_v13 = vld [vmem:[%s573_s1 + $0x98] sm:$0xff]  ;;  %v175_v17 = vld [vmem:[%s165_s16 + $0x8] sm:$0xff] }
   0xf   : > { %215 = vmatpush.msra.mxu0 %v388_v4  ;;  %409 = vmatpush.msra.mxu3 %v388_v4  ;;  %v386_v11 = vld [vmem:[%s573_s1 + $0x60] sm:$0xff]  ;;  %v385_v14 = vld [vmem:[%s573_s1 + $0x58] sm:$0xff]  ;;  %v396_v18 = vld [vmem:[%s573_s1 + $0x90] sm:$0xff]  ;;  %178 = vst.msk [vmem:[#allocation2 + $0x9] sm:$0xff] %vm176_vm1, %v175_v17 }
  0x10   : > { %244 = vmatpush.msra.mxu1 %v187_v6  ;;  %285 = vmatpush.msra.mxu2 %v399_v5  ;;  %v185_v12 = vld [vmem:[%s573_s1 + $0x20] sm:$0xff]  ;;  %v184_v16 = vld [vmem:[%s573_s1 + $0x18] sm:$0xff]  ;;  %v384_v19 = vld [vmem:[%s573_s1 + $0x50] sm:$0xff] }
  0x11   : > { %216 = vmatpush.msra.mxu0 %v387_v7  ;;  %410 = vmatpush.msra.mxu3 %v387_v7  ;;  %v174_v15 = vld [vmem:[%s165_s16] sm:$0xff]  ;;  %v183_v20 = vld [vmem:[%s573_s1 + $0x10] sm:$0xff]  ;;  %v395_v21 = vld [vmem:[%s573_s1 + $0x88] sm:$0xff] }
  0x12   : > { %245 = vmatpush.msra.mxu1 %v186_v9  ;;  %286 = vmatpush.msra.mxu2 %v398_v10  ;;  %177 = vst.msk [vmem:[#allocation2 + $0x1] sm:$0xff] %vm176_vm1, %v174_v15  ;;  %v383_v22 = vld [vmem:[%s573_s1 + $0x48] sm:$0xff]  ;;  %v394_v24 = vld [vmem:[%s573_s1 + $0x80] sm:$0xff] }
  0x13   : > { %217 = vmatpush.msra.mxu0 %v386_v11  ;;  %411 = vmatpush.msra.mxu3 %v386_v11  ;;  %v182_v23 = vld [vmem:[%s573_s1 + $0x8] sm:$0xff]  ;;  %v382_v25 = vld [vmem:[%s573_s1 + $0x40] sm:$0xff] }
  0x14   : > { %246 = vmatpush.msra.mxu1 %v185_v12  ;;  %287 = vmatpush.msra.mxu2 %v397_v13  ;;  %v181_v26 = vld [vmem:[%s573_s1] sm:$0xff] }
  0x15   : > { %218 = vmatpush.msra.mxu0 %v385_v14  ;;  %412 = vmatpush.msra.mxu3 %v385_v14  ;;  %v425_v36 = vld [vmem:[%s574_s2] ss:$0 sm:$0xff]  ;;  %v426_v40 = vld [vmem:[%s574_s2 + $0x1] ss:$0 sm:$0xff]  ;;  %v427_v44 = vld [vmem:[%s574_s2 + $0x2] ss:$0 sm:$0xff] }
  0x16   : > { %247 = vmatpush.msra.mxu1 %v184_v16  ;;  %288 = vmatpush.msra.mxu2 %v396_v18  ;;  %v190_v30 = vld [vmem:[#allocation2 + $0x9] sm:$0xff] }
  0x17   : > { %219 = vmatpush.msra.mxu0 %v384_v19  ;;  %413 = vmatpush.msra.mxu3 %v384_v19  ;;  %v259_v31 = vld [vmem:[#allocation2 + $0xa] sm:$0xff] }
  0x18   : > { %248 = vmatpush.msra.mxu1 %v183_v20  ;;  %289 = vmatpush.msra.mxu2 %v395_v21 }
  0x19   : > { %220 = vmatpush.msra.mxu0 %v383_v22  ;;  %414 = vmatpush.msra.mxu3 %v383_v22  ;;  %v189_v27 = vld [vmem:[#allocation2 + $0x1] sm:$0xff] }
  0x1a   : > { %249 = vmatpush.msra.mxu1 %v182_v23  ;;  %v179_v28 = vld [vmem:[#allocation2] sm:$0xff]  ;;  %290 = vmatpush.msra.mxu2 %v394_v24  ;;  %v180_v32 = vld [vmem:[#allocation2 + $0x8] sm:$0xff] }
  0x1b   : > { %v258_v29 = vld [vmem:[#allocation2 + $0x2] sm:$0xff]  ;;  %221 = vmatpush.msra.mxu0 %v382_v25  ;;  %415 = vmatpush.msra.mxu3 %v382_v25 }
  0x1c   : > { %402 = vmatmul.msk.f32.vlgmr.msra.gmra.mxu2 %vm176_vm1, %v258_v29  ;;  %250 = vmatpush.msra.mxu1 %v181_v26 }
  0x1d   : > { %390 = vmatmul.msk.f32.vlgmr.msra.gmra.mxu0 %vm176_vm1, %v189_v27  ;;  %392 = vmatmul.msk.f32.vlgmr.msra.gmra.mxu1 %vm176_vm1, %v179_v28 }
  0x1e   : > { %391 = vmatmul.msk.f32.vlgmr.msra.gmra.mxu3 %vm176_vm1, %v190_v30 }
  0x24   : > { %403 = vmatmul.msk.f32.gmra.mxu2 %vm176_vm1, %v259_v31 }
  0x25   : > { %393 = vmatmul.msk.f32.gmra.mxu1 %vm176_vm1, %v180_v32 }
  0x9a   : > { %v223_v33 = vpop.f32.mrf.mxu0  ;;  %v252_v34 = vpop.f32.mrf.mxu1 }
  0x9b   : > { %v253_v35 = vadd.f32 %v252_v34, %v223_v33 }
  0x9f   : > { %v292_v37 = vpop.f32.mrf.mxu2 }
  0xa0   : > { %v298_v38 = vadd.f32 %v292_v37, %v253_v35 }
  0xa1   : > { %v226_v41 = vpop.f32.mrf.mxu3 }
  0xa2   : > { %v302_v39 = vadd.f32 %v425_v36, %v298_v38  ;;  %v255_v42 = vpop.f32.mrf.mxu1 }
  0xa3   : > { %v256_v45 = vadd.f32 %v255_v42, %v226_v41 }
  0xa4   : > { %v304_v43 = vmax.f32 %v302_v39, 0.0 }
  0xa6   : > { %v308_v46 = vmul.f32 %v426_v40, %v304_v43 }
  0xa7   : > { %v295_v47 = vpop.f32.mrf.mxu2 }
  0xa8   : > { %v312_v48 = vadd.f32 %v427_v44, %v308_v46  ;;  %v299_v49 = vadd.f32 %v295_v47, %v256_v45 }
  0xaa   : > { %v314_v50 = vmax.f32 %v312_v48, 0.0  ;;  %v303_v51 = vadd.f32 %v425_v36, %v299_v49 }
  0xac   : > { %316 = vst [vmem:[%s170_s25] sm:$0xff] %v314_v50  ;;  %v305_v52 = vmax.f32 %v303_v51, 0.0 }
  0xae   : > { %v309_v53 = vmul.f32 %v426_v40, %v305_v52 }
  0xb0   : > { %v313_v54 = vadd.f32 %v427_v44, %v309_v53 }
  0xb2   : > { %v315_v55 = vmax.f32 %v313_v54, 0.0 }
  0xb4   : > { %317 = vst [vmem:[%s170_s25 + $0x8] sm:$0xff] %v315_v55 }
  0xb5 PF: > { %s13_s12 = sadd.s32 1, %s434_s12  }
  0xb6   : > { %p10_p4 = scmp.ge.s32.totalorder %s13_s12, 4  }
  0xb8   :  { %12 = sbr.rel (!%p10_p4) target bundleno = 1 (0x1), region = 64 }

</bundles_post_ra>
